<compile_context>
chip_gen: v6e
topology: v6e:2x2x1
jax: 0.10.0
libtpu: 0.0.40
codegen_flags: <defaults>
</compile_context>

<pallas_src>
import functools
import math

import jax
import jax.numpy as jnp
from jax import lax
from jax.experimental import pallas as pl
from jax.experimental.pallas import tpu as pltpu

# ----------------------------- model config ---------------------------------
SEQ = 8
HIDDEN = 32          # stands in for 768 of bert-base
NUM_HEADS = 4
HEAD_DIM = HIDDEN // NUM_HEADS
INTERMEDIATE = 64    # stands in for 3072
NUM_LAYERS = 2       # stands in for 12
VOCAB = 100
MAX_POS = 16
OUTPUT_SIZE = 4
OUT_PAD = 128        # lane-dense padded width for the tiny (1, OUTPUT_SIZE) logits
LN_EPS = 1e-12       # BERT default


# ---------------------------- in-kernel helpers ------------------------------
def _layernorm(x, g, b):
    mu = jnp.mean(x, axis=-1, keepdims=True)
    var = jnp.mean(jnp.square(x - mu), axis=-1, keepdims=True)
    return (x - mu) * lax.rsqrt(var + LN_EPS) * g + b


def _gelu_exact(x):
    # exact (erf) GELU, as used by HF bert-base
    return x * 0.5 * (1.0 + lax.erf(x * jnp.float32(1.0 / math.sqrt(2.0))))


def _bf16_dot(x, w_ref):
    # bf16 MXU operands, f32 accumulation; epilogues stay f32.
    return jnp.dot(x.astype(jnp.bfloat16), w_ref[...],
                   preferred_element_type=jnp.float32)


# ------------------------------ fused kernel ---------------------------------
def _bert_fused_kernel(emb_ref, bias_ref, emb_g_ref, emb_b_ref,
                       wqkv_ref, bqkv_ref, wo_ref, bo_ref,
                       ln1_g_ref, ln1_b_ref,
                       w1_ref, b1_ref, w2_ref, b2_ref,
                       ln2_g_ref, ln2_b_ref,
                       wp_ref, bp_ref, wout_ref, bout_ref,
                       out_ref, hidden_ref, *, scale):
    layer = pl.program_id(0)

    # layer 0: embedding LayerNorm (no residual) seeds the resident hidden state
    @pl.when(layer == 0)
    def _():
        hidden_ref[...] = _layernorm(emb_ref[...], emb_g_ref[...], emb_b_ref[...])

    h = hidden_ref[...]                                    # (S, HIDDEN) f32

    # fused QKV projection -> (S, 3*HIDDEN), single lane-dense matmul
    qkv = _bf16_dot(h, wqkv_ref) + bqkv_ref[...]

    bias = bias_ref[...]                                   # (1, S), hoisted once

    # per-head attention; activations stay (S, HIDDEN)-major (no head transpose)
    ctx_parts = []
    for hd in range(NUM_HEADS):
        lo = hd * HEAD_DIM
        q = qkv[:, lo:lo + HEAD_DIM]
        k = qkv[:, HIDDEN + lo:HIDDEN + lo + HEAD_DIM]
        v = qkv[:, 2 * HIDDEN + lo:2 * HIDDEN + lo + HEAD_DIM]
        s = jnp.dot(q, k.T, preferred_element_type=jnp.float32) * scale + bias
        m = jnp.max(s, axis=-1, keepdims=True)
        p = jnp.exp(s - m)
        p = p * pl.reciprocal(jnp.sum(p, axis=-1, keepdims=True), approx=True)
        ctx_parts.append(jnp.dot(p, v, preferred_element_type=jnp.float32))
    ctx = jnp.concatenate(ctx_parts, axis=-1)              # (S, HIDDEN)

    # attention output projection + residual + LN1
    attn = _bf16_dot(ctx, wo_ref) + bo_ref[...]
    h1 = _layernorm(attn + h, ln1_g_ref[...], ln1_b_ref[...])

    # FFN (exact GELU) + residual + LN2
    ffn = _gelu_exact(_bf16_dot(h1, w1_ref) + b1_ref[...])
    ffn = _bf16_dot(ffn, w2_ref) + b2_ref[...]
    h2 = _layernorm(ffn + h1, ln2_g_ref[...], ln2_b_ref[...])

    hidden_ref[...] = h2                                   # carry to next layer

    # last layer: fused BERT pooler (tanh on CLS) + output Linear,
    # stored into a 128-wide lane-dense padded buffer.
    @pl.when(layer == pl.num_programs(0) - 1)
    def _():
        cls = h2[0:1, :]                                   # (1, HIDDEN)
        pooled = jnp.tanh(_bf16_dot(cls, wp_ref) + bp_ref[...])
        out_ref[...] = _bf16_dot(pooled, wout_ref) + bout_ref[...]


# ----------------------------- BlockSpec helpers -----------------------------
def _full_spec(shape):
    n = len(shape)
    return pl.BlockSpec(shape, lambda l: (0,) * n)


def _layer_spec(shape):
    # stacked per-layer tensor (NUM_LAYERS, *shape); leading dim squeezed
    n = len(shape)
    return pl.BlockSpec((None,) + shape, lambda l: (l,) + (0,) * n)


# ------------------------------ parameters -----------------------------------
def init_params(key):
    def dense(key, shape):
        return jax.random.normal(key, shape, dtype=jnp.float32) * 0.02

    keys = jax.random.split(key, 8 + NUM_LAYERS)
    params = {
        "word_emb": dense(keys[0], (VOCAB, HIDDEN)),
        "pos_emb": dense(keys[1], (MAX_POS, HIDDEN)),
        "type_emb": dense(keys[2], (2, HIDDEN)),
        "emb_ln_g": jnp.ones((1, HIDDEN), jnp.float32),
        "emb_ln_b": jnp.zeros((1, HIDDEN), jnp.float32),
        "w_pool": dense(keys[3], (HIDDEN, HIDDEN)),
        "b_pool": jnp.zeros((1, HIDDEN), jnp.float32),
        "w_out": dense(keys[4], (HIDDEN, OUTPUT_SIZE)),
        "b_out": jnp.zeros((1, OUTPUT_SIZE), jnp.float32),
        "layers": [],
    }
    for li in range(NUM_LAYERS):
        lk = jax.random.split(keys[8 + li], 6)
        params["layers"].append({
            "wq": dense(lk[0], (HIDDEN, HIDDEN)),
            "bq": jnp.zeros((1, HIDDEN), jnp.float32),
            "wk": dense(lk[1], (HIDDEN, HIDDEN)),
            "bk": jnp.zeros((1, HIDDEN), jnp.float32),
            "wv": dense(lk[2], (HIDDEN, HIDDEN)),
            "bv": jnp.zeros((1, HIDDEN), jnp.float32),
            "wo": dense(lk[3], (HIDDEN, HIDDEN)),
            "bo": jnp.zeros((1, HIDDEN), jnp.float32),
            "ln1_g": jnp.ones((1, HIDDEN), jnp.float32),
            "ln1_b": jnp.zeros((1, HIDDEN), jnp.float32),
            "w1": dense(lk[4], (HIDDEN, INTERMEDIATE)),
            "b1": jnp.zeros((1, INTERMEDIATE), jnp.float32),
            "w2": dense(lk[5], (INTERMEDIATE, HIDDEN)),
            "b2": jnp.zeros((1, HIDDEN), jnp.float32),
            "ln2_g": jnp.ones((1, HIDDEN), jnp.float32),
            "ln2_b": jnp.zeros((1, HIDDEN), jnp.float32),
        })
    return params


def pack_params(params):
    """Stack per-layer weights on a leading layer axis, fuse Q|K|V into one
    (HIDDEN, 3*HIDDEN) weight, cast matmul weights to bf16 (f32 accumulation
    happens in-kernel) and pad the tiny output head to a lane-dense width."""
    L = params["layers"]

    def stack(name, dtype=jnp.float32):
        return jnp.stack([l[name] for l in L]).astype(dtype)

    wqkv = jnp.stack(
        [jnp.concatenate([l["wq"], l["wk"], l["wv"]], axis=1) for l in L]
    ).astype(jnp.bfloat16)
    bqkv = jnp.stack(
        [jnp.concatenate([l["bq"], l["bk"], l["bv"]], axis=1) for l in L])

    w_out = jnp.zeros((HIDDEN, OUT_PAD), jnp.float32)
    w_out = w_out.at[:, :OUTPUT_SIZE].set(params["w_out"]).astype(jnp.bfloat16)
    b_out = jnp.zeros((1, OUT_PAD), jnp.float32)
    b_out = b_out.at[:, :OUTPUT_SIZE].set(params["b_out"])

    return {
        "word_emb": params["word_emb"],
        "pos_emb": params["pos_emb"],
        "type_emb": params["type_emb"],
        "emb_ln_g": params["emb_ln_g"],
        "emb_ln_b": params["emb_ln_b"],
        "wqkv": wqkv, "bqkv": bqkv,
        "wo": stack("wo", jnp.bfloat16), "bo": stack("bo"),
        "ln1_g": stack("ln1_g"), "ln1_b": stack("ln1_b"),
        "w1": stack("w1", jnp.bfloat16), "b1": stack("b1"),
        "w2": stack("w2", jnp.bfloat16), "b2": stack("b2"),
        "ln2_g": stack("ln2_g"), "ln2_b": stack("ln2_b"),
        "w_pool": params["w_pool"].astype(jnp.bfloat16),
        "b_pool": params["b_pool"],
        "w_out": w_out, "b_out": b_out,
    }


# -------------------------------- forward ------------------------------------
@jax.jit
def bert_class_forward(packed, input_ids, attention_mask):
    """Equivalent of BERTClass.forward: returns (1, OUTPUT_SIZE)."""
    S = input_ids.shape[0]

    # embeddings (token type ids are all zero, as in the reference forward)
    # TODO(synk): embedding-table gathers stay in plain JAX (no clean Pallas gather here).
    emb = (packed["word_emb"][input_ids]
           + packed["pos_emb"][:S]
           + packed["type_emb"][0][None, :])                          # (S, HIDDEN) f32

    # additive attention-mask bias, shape (1, S), broadcast once inside kernel
    bias = (1.0 - attention_mask.astype(jnp.float32))[None, :] * -1e9

    kernel = functools.partial(_bert_fused_kernel,
                               scale=1.0 / math.sqrt(HEAD_DIM))

    padded = pl.pallas_call(
        kernel,
        out_shape=jax.ShapeDtypeStruct((1, OUT_PAD), jnp.float32),
        grid=(NUM_LAYERS,),
        in_specs=[
            _full_spec((S, HIDDEN)),              # emb
            _full_spec((1, S)),                   # attention bias
            _full_spec((1, HIDDEN)),              # emb_ln_g
            _full_spec((1, HIDDEN)),              # emb_ln_b
            _layer_spec((HIDDEN, 3 * HIDDEN)),    # wqkv (fused)
            _layer_spec((1, 3 * HIDDEN)),         # bqkv
            _layer_spec((HIDDEN, HIDDEN)),        # wo
            _layer_spec((1, HIDDEN)),             # bo
            _layer_spec((1, HIDDEN)),             # ln1_g
            _layer_spec((1, HIDDEN)),             # ln1_b
            _layer_spec((HIDDEN, INTERMEDIATE)),  # w1
            _layer_spec((1, INTERMEDIATE)),       # b1
            _layer_spec((INTERMEDIATE, HIDDEN)),  # w2
            _layer_spec((1, HIDDEN)),             # b2
            _layer_spec((1, HIDDEN)),             # ln2_g
            _layer_spec((1, HIDDEN)),             # ln2_b
            _full_spec((HIDDEN, HIDDEN)),         # w_pool
            _full_spec((1, HIDDEN)),              # b_pool
            _full_spec((HIDDEN, OUT_PAD)),        # w_out (padded lane-dense)
            _full_spec((1, OUT_PAD)),             # b_out (padded lane-dense)
        ],
        out_specs=_full_spec((1, OUT_PAD)),
        scratch_shapes=[pltpu.VMEM((S, HIDDEN), jnp.float32)],  # resident hidden
        compiler_params=pltpu.CompilerParams(
            dimension_semantics=("arbitrary",)),  # sequential carry over layers
    )(emb, bias, packed["emb_ln_g"], packed["emb_ln_b"],
      packed["wqkv"], packed["bqkv"], packed["wo"], packed["bo"],
      packed["ln1_g"], packed["ln1_b"],
      packed["w1"], packed["b1"], packed["w2"], packed["b2"],
      packed["ln2_g"], packed["ln2_b"],
      packed["w_pool"], packed["b_pool"], packed["w_out"], packed["b_out"])

    return padded[:, :OUTPUT_SIZE]                # (1, OUTPUT_SIZE)


# ---------------------------------- main -------------------------------------
if __name__ == "__main__":
    key = jax.random.PRNGKey(0)
    pkey, ikey = jax.random.split(key)
    params = init_params(pkey)
    packed = pack_params(params)

    input_ids = jax.random.randint(ikey, (SEQ,), 0, VOCAB, dtype=jnp.int32)
    attention_mask = jnp.array([1, 1, 1, 1, 1, 1, 0, 0], dtype=jnp.int32)

    logits = bert_class_forward(packed, input_ids, attention_mask)
    logits = jax.block_until_ready(logits)
    assert logits.shape == (1, OUTPUT_SIZE)
    assert bool(jnp.all(jnp.isfinite(logits)))
    print("KERNEL_OK")
</pallas_src>

<mosaic_0001>
module attributes {stable_mosaic.version = 11 : i64} {
  func.func @_bert_fused_kernel(%arg0: i32, %arg1: memref<8x32xf32, #tpu.memory_space<vmem>>, %arg2: memref<1x8xf32, #tpu.memory_space<vmem>>, %arg3: memref<1x32xf32, #tpu.memory_space<vmem>>, %arg4: memref<1x32xf32, #tpu.memory_space<vmem>>, %arg5: memref<1x32x96xbf16, #tpu.memory_space<vmem>>, %arg6: memref<1x1x96xf32, #tpu.memory_space<vmem>>, %arg7: memref<1x32x32xbf16, #tpu.memory_space<vmem>>, %arg8: memref<1x1x32xf32, #tpu.memory_space<vmem>>, %arg9: memref<1x1x32xf32, #tpu.memory_space<vmem>>, %arg10: memref<1x1x32xf32, #tpu.memory_space<vmem>>, %arg11: memref<1x32x64xbf16, #tpu.memory_space<vmem>>, %arg12: memref<1x1x64xf32, #tpu.memory_space<vmem>>, %arg13: memref<1x64x32xbf16, #tpu.memory_space<vmem>>, %arg14: memref<1x1x32xf32, #tpu.memory_space<vmem>>, %arg15: memref<1x1x32xf32, #tpu.memory_space<vmem>>, %arg16: memref<1x1x32xf32, #tpu.memory_space<vmem>>, %arg17: memref<32x32xbf16, #tpu.memory_space<vmem>>, %arg18: memref<1x32xf32, #tpu.memory_space<vmem>>, %arg19: memref<32x128xbf16, #tpu.memory_space<vmem>>, %arg20: memref<1x128xf32, #tpu.memory_space<vmem>>, %arg21: memref<1x128xf32, #tpu.memory_space<vmem>>, %arg22: memref<8x32xf32, #tpu.memory_space<vmem>>) attributes {dimension_semantics = [#tpu.dimension_semantics<arbitrary>], iteration_bounds = array<i64: 2>, scalar_prefetch = 0 : i64, scratch_operands = 1 : i64, tpu.core_type = #tpu.core_type<tc>, window_params = [{pipeline_mode = #tpu.pipeline_mode<synchronous>, transform_indices = @transform_0, window_bounds = array<i64: 8, 32>}, {pipeline_mode = #tpu.pipeline_mode<synchronous>, transform_indices = @transform_1, window_bounds = array<i64: 1, 8>}, {pipeline_mode = #tpu.pipeline_mode<synchronous>, transform_indices = @transform_2, window_bounds = array<i64: 1, 32>}, {pipeline_mode = #tpu.pipeline_mode<synchronous>, transform_indices = @transform_3, window_bounds = array<i64: 1, 32>}, {transform_indices = @transform_4, window_bounds = array<i64: 1, 32, 96>}, {transform_indices = @transform_5, window_bounds = array<i64: 1, 1, 96>}, {transform_indices = @transform_6, window_bounds = array<i64: 1, 32, 32>}, {transform_indices = @transform_7, window_bounds = array<i64: 1, 1, 32>}, {transform_indices = @transform_8, window_bounds = array<i64: 1, 1, 32>}, {transform_indices = @transform_9, window_bounds = array<i64: 1, 1, 32>}, {transform_indices = @transform_10, window_bounds = array<i64: 1, 32, 64>}, {transform_indices = @transform_11, window_bounds = array<i64: 1, 1, 64>}, {transform_indices = @transform_12, window_bounds = array<i64: 1, 64, 32>}, {transform_indices = @transform_13, window_bounds = array<i64: 1, 1, 32>}, {transform_indices = @transform_14, window_bounds = array<i64: 1, 1, 32>}, {transform_indices = @transform_15, window_bounds = array<i64: 1, 1, 32>}, {pipeline_mode = #tpu.pipeline_mode<synchronous>, transform_indices = @transform_16, window_bounds = array<i64: 32, 32>}, {pipeline_mode = #tpu.pipeline_mode<synchronous>, transform_indices = @transform_17, window_bounds = array<i64: 1, 32>}, {pipeline_mode = #tpu.pipeline_mode<synchronous>, transform_indices = @transform_18, window_bounds = array<i64: 32, 128>}, {pipeline_mode = #tpu.pipeline_mode<synchronous>, transform_indices = @transform_19, window_bounds = array<i64: 1, 128>}, {pipeline_mode = #tpu.pipeline_mode<synchronous>, transform_indices = @transform_20, window_bounds = array<i64: 1, 128>}]} {
    %c0_i32 = arith.constant 0 : i32
    %0 = arith.cmpi eq, %arg0, %c0_i32 : i32
    %1 = arith.extui %0 : i1 to i32
    %c0_i32_0 = arith.constant 0 : i32
    %2 = arith.cmpi ne, %1, %c0_i32_0 : i32
    scf.if %2 {
      %c0_79 = arith.constant 0 : index
      %c0_80 = arith.constant 0 : index
      %184 = vector.load %arg1[%c0_79, %c0_80] : memref<8x32xf32, #tpu.memory_space<vmem>>, vector<8x32xf32>
      %c0_81 = arith.constant 0 : index
      %c0_82 = arith.constant 0 : index
      %185 = vector.load %arg3[%c0_81, %c0_82] : memref<1x32xf32, #tpu.memory_space<vmem>>, vector<1x32xf32>
      %c0_83 = arith.constant 0 : index
      %c0_84 = arith.constant 0 : index
      %186 = vector.load %arg4[%c0_83, %c0_84] : memref<1x32xf32, #tpu.memory_space<vmem>>, vector<1x32xf32>
      %cst_85 = arith.constant dense<0.000000e+00> : vector<8xf32>
      %187 = vector.multi_reduction <add>, %184, %cst_85 [1] : vector<8x32xf32> to vector<8xf32>
      %188 = vector.shape_cast %187 : vector<8xf32> to vector<8x1xf32>
      %cst_86 = arith.constant 3.200000e+01 : f32
      %189 = vector.broadcast %cst_86 : f32 to vector<8x1xf32>
      %190 = arith.divf %188, %189 : vector<8x1xf32>
      %191 = vector.broadcast %190 : vector<8x1xf32> to vector<8x32xf32>
      %192 = arith.subf %184, %191 : vector<8x32xf32>
      %193 = arith.mulf %192, %192 : vector<8x32xf32>
      %cst_87 = arith.constant dense<0.000000e+00> : vector<8xf32>
      %194 = vector.multi_reduction <add>, %193, %cst_87 [1] : vector<8x32xf32> to vector<8xf32>
      %195 = vector.shape_cast %194 : vector<8xf32> to vector<8x1xf32>
      %cst_88 = arith.constant 3.200000e+01 : f32
      %196 = vector.broadcast %cst_88 : f32 to vector<8x1xf32>
      %197 = arith.divf %195, %196 : vector<8x1xf32>
      %198 = vector.broadcast %190 : vector<8x1xf32> to vector<8x32xf32>
      %199 = arith.subf %184, %198 : vector<8x32xf32>
      %cst_89 = arith.constant 9.99999996E-13 : f32
      %200 = vector.broadcast %cst_89 : f32 to vector<8x1xf32>
      %201 = arith.addf %197, %200 : vector<8x1xf32>
      %202 = math.rsqrt %201 : vector<8x1xf32>
      %203 = vector.broadcast %202 : vector<8x1xf32> to vector<8x32xf32>
      %204 = arith.mulf %199, %203 : vector<8x32xf32>
      %205 = vector.broadcast %185 : vector<1x32xf32> to vector<8x32xf32>
      %206 = arith.mulf %204, %205 : vector<8x32xf32>
      %207 = vector.broadcast %186 : vector<1x32xf32> to vector<8x32xf32>
      %208 = arith.addf %206, %207 : vector<8x32xf32>
      %c0_90 = arith.constant 0 : index
      %c0_91 = arith.constant 0 : index
      %209 = vector.load %arg22[%c0_90, %c0_91] : memref<8x32xf32, #tpu.memory_space<vmem>>, vector<8x32xf32>
      tpu.vector_store %arg22[%c0_90, %c0_91], %208 {strides = array<i32>} : memref<8x32xf32, #tpu.memory_space<vmem>>, vector<8x32xf32>,
    } else {
    }
    %c0 = arith.constant 0 : index
    %c0_1 = arith.constant 0 : index
    %3 = vector.load %arg22[%c0, %c0_1] : memref<8x32xf32, #tpu.memory_space<vmem>>, vector<8x32xf32>
    %4 = arith.truncf %3 : vector<8x32xf32> to vector<8x32xbf16>
    %c0_2 = arith.constant 0 : index
    %c0_3 = arith.constant 0 : index
    %c0_4 = arith.constant 0 : index
    %5 = vector.load %arg5[%c0_2, %c0_3, %c0_4] : memref<1x32x96xbf16, #tpu.memory_space<vmem>>, vector<1x32x96xbf16>
    %6 = vector.shape_cast %5 : vector<1x32x96xbf16> to vector<32x96xbf16>
    %cst = arith.constant dense<0.000000e+00> : vector<8x96xf32>
    %7 = tpu.matmul %4, %6, %cst {dimension_numbers = #tpu.dot_dimension_numbers<[1], [0], [0], [1], [0, 0, 1, 1], [], []>} : vector<8x32xbf16>, vector<32x96xbf16>, vector<8x96xf32> -> vector<8x96xf32>
    %c0_5 = arith.constant 0 : index
    %c0_6 = arith.constant 0 : index
    %c0_7 = arith.constant 0 : index
    %8 = vector.load %arg6[%c0_5, %c0_6, %c0_7] : memref<1x1x96xf32, #tpu.memory_space<vmem>>, vector<1x1x96xf32>
    %9 = vector.shape_cast %8 : vector<1x1x96xf32> to vector<1x96xf32>
    %10 = vector.broadcast %9 : vector<1x96xf32> to vector<8x96xf32>
    %11 = arith.addf %7, %10 : vector<8x96xf32>
    %c0_8 = arith.constant 0 : index
    %c0_9 = arith.constant 0 : index
    %12 = vector.load %arg2[%c0_8, %c0_9] : memref<1x8xf32, #tpu.memory_space<vmem>>, vector<1x8xf32>
    %13 = vector.extract_strided_slice %11 {offsets = [0, 0], sizes = [8, 8], strides = [1, 1]} : vector<8x96xf32> to vector<8x8xf32>
    %14 = vector.extract_strided_slice %11 {offsets = [0, 32], sizes = [8, 8], strides = [1, 1]} : vector<8x96xf32> to vector<8x8xf32>
    %15 = vector.extract_strided_slice %11 {offsets = [0, 64], sizes = [8, 8], strides = [1, 1]} : vector<8x96xf32> to vector<8x8xf32>
    %16 = tpu.transpose %14, [1, 0] : vector<8x8xf32> -> vector<8x8xf32>
    %cst_10 = arith.constant dense<0.000000e+00> : vector<8x8xf32>
    %17 = tpu.matmul %13, %16, %cst_10 {dimension_numbers = #tpu.dot_dimension_numbers<[1], [0], [0], [1], [0, 0, 1, 1], [], []>} : vector<8x8xf32>, vector<8x8xf32>, vector<8x8xf32> -> vector<8x8xf32>
    %cst_11 = arith.constant 0.353553385 : f32
    %18 = vector.broadcast %cst_11 : f32 to vector<8x8xf32>
    %19 = arith.mulf %17, %18 : vector<8x8xf32>
    %20 = vector.broadcast %12 : vector<1x8xf32> to vector<8x8xf32>
    %21 = arith.addf %19, %20 : vector<8x8xf32>
    %cst_12 = arith.constant dense<0xFF800000> : vector<8xf32>
    %22 = vector.multi_reduction <maximumf>, %21, %cst_12 [1] : vector<8x8xf32> to vector<8xf32>
    %23 = vector.shape_cast %22 : vector<8xf32> to vector<8x1xf32>
    %24 = vector.broadcast %23 : vector<8x1xf32> to vector<8x8xf32>
    %25 = arith.subf %21, %24 : vector<8x8xf32>
    %26 = math.exp %25 : vector<8x8xf32>
    %cst_13 = arith.constant dense<0.000000e+00> : vector<8xf32>
    %27 = vector.multi_reduction <add>, %26, %cst_13 [1] : vector<8x8xf32> to vector<8xf32>
    %28 = vector.shape_cast %27 : vector<8xf32> to vector<8x1xf32>
    %29 = tpu.reciprocal %28 {approx = true} : vector<8x1xf32> -> vector<8x1xf32>
    %30 = vector.broadcast %29 : vector<8x1xf32> to vector<8x8xf32>
    %31 = arith.mulf %26, %30 : vector<8x8xf32>
    %cst_14 = arith.constant dense<0.000000e+00> : vector<8x8xf32>
    %32 = tpu.matmul %31, %15, %cst_14 {dimension_numbers = #tpu.dot_dimension_numbers<[1], [0], [0], [1], [0, 0, 1, 1], [], []>} : vector<8x8xf32>, vector<8x8xf32>, vector<8x8xf32> -> vector<8x8xf32>
    %33 = vector.extract_strided_slice %11 {offsets = [0, 8], sizes = [8, 8], strides = [1, 1]} : vector<8x96xf32> to vector<8x8xf32>
    %34 = vector.extract_strided_slice %11 {offsets = [0, 40], sizes = [8, 8], strides = [1, 1]} : vector<8x96xf32> to vector<8x8xf32>
    %35 = vector.extract_strided_slice %11 {offsets = [0, 72], sizes = [8, 8], strides = [1, 1]} : vector<8x96xf32> to vector<8x8xf32>
    %36 = tpu.transpose %34, [1, 0] : vector<8x8xf32> -> vector<8x8xf32>
    %cst_15 = arith.constant dense<0.000000e+00> : vector<8x8xf32>
    %37 = tpu.matmul %33, %36, %cst_15 {dimension_numbers = #tpu.dot_dimension_numbers<[1], [0], [0], [1], [0, 0, 1, 1], [], []>} : vector<8x8xf32>, vector<8x8xf32>, vector<8x8xf32> -> vector<8x8xf32>
    %cst_16 = arith.constant 0.353553385 : f32
    %38 = vector.broadcast %cst_16 : f32 to vector<8x8xf32>
    %39 = arith.mulf %37, %38 : vector<8x8xf32>
    %40 = vector.broadcast %12 : vector<1x8xf32> to vector<8x8xf32>
    %41 = arith.addf %39, %40 : vector<8x8xf32>
    %cst_17 = arith.constant dense<0xFF800000> : vector<8xf32>
    %42 = vector.multi_reduction <maximumf>, %41, %cst_17 [1] : vector<8x8xf32> to vector<8xf32>
    %43 = vector.shape_cast %42 : vector<8xf32> to vector<8x1xf32>
    %44 = vector.broadcast %43 : vector<8x1xf32> to vector<8x8xf32>
    %45 = arith.subf %41, %44 : vector<8x8xf32>
    %46 = math.exp %45 : vector<8x8xf32>
    %cst_18 = arith.constant dense<0.000000e+00> : vector<8xf32>
    %47 = vector.multi_reduction <add>, %46, %cst_18 [1] : vector<8x8xf32> to vector<8xf32>
    %48 = vector.shape_cast %47 : vector<8xf32> to vector<8x1xf32>
    %49 = tpu.reciprocal %48 {approx = true} : vector<8x1xf32> -> vector<8x1xf32>
    %50 = vector.broadcast %49 : vector<8x1xf32> to vector<8x8xf32>
    %51 = arith.mulf %46, %50 : vector<8x8xf32>
    %cst_19 = arith.constant dense<0.000000e+00> : vector<8x8xf32>
    %52 = tpu.matmul %51, %35, %cst_19 {dimension_numbers = #tpu.dot_dimension_numbers<[1], [0], [0], [1], [0, 0, 1, 1], [], []>} : vector<8x8xf32>, vector<8x8xf32>, vector<8x8xf32> -> vector<8x8xf32>
    %53 = vector.extract_strided_slice %11 {offsets = [0, 16], sizes = [8, 8], strides = [1, 1]} : vector<8x96xf32> to vector<8x8xf32>
    %54 = vector.extract_strided_slice %11 {offsets = [0, 48], sizes = [8, 8], strides = [1, 1]} : vector<8x96xf32> to vector<8x8xf32>
    %55 = vector.extract_strided_slice %11 {offsets = [0, 80], sizes = [8, 8], strides = [1, 1]} : vector<8x96xf32> to vector<8x8xf32>
    %56 = tpu.transpose %54, [1, 0] : vector<8x8xf32> -> vector<8x8xf32>
    %cst_20 = arith.constant dense<0.000000e+00> : vector<8x8xf32>
    %57 = tpu.matmul %53, %56, %cst_20 {dimension_numbers = #tpu.dot_dimension_numbers<[1], [0], [0], [1], [0, 0, 1, 1], [], []>} : vector<8x8xf32>, vector<8x8xf32>, vector<8x8xf32> -> vector<8x8xf32>
    %cst_21 = arith.constant 0.353553385 : f32
    %58 = vector.broadcast %cst_21 : f32 to vector<8x8xf32>
    %59 = arith.mulf %57, %58 : vector<8x8xf32>
    %60 = vector.broadcast %12 : vector<1x8xf32> to vector<8x8xf32>
    %61 = arith.addf %59, %60 : vector<8x8xf32>
    %cst_22 = arith.constant dense<0xFF800000> : vector<8xf32>
    %62 = vector.multi_reduction <maximumf>, %61, %cst_22 [1] : vector<8x8xf32> to vector<8xf32>
    %63 = vector.shape_cast %62 : vector<8xf32> to vector<8x1xf32>
    %64 = vector.broadcast %63 : vector<8x1xf32> to vector<8x8xf32>
    %65 = arith.subf %61, %64 : vector<8x8xf32>
    %66 = math.exp %65 : vector<8x8xf32>
    %cst_23 = arith.constant dense<0.000000e+00> : vector<8xf32>
    %67 = vector.multi_reduction <add>, %66, %cst_23 [1] : vector<8x8xf32> to vector<8xf32>
    %68 = vector.shape_cast %67 : vector<8xf32> to vector<8x1xf32>
    %69 = tpu.reciprocal %68 {approx = true} : vector<8x1xf32> -> vector<8x1xf32>
    %70 = vector.broadcast %69 : vector<8x1xf32> to vector<8x8xf32>
    %71 = arith.mulf %66, %70 : vector<8x8xf32>
    %cst_24 = arith.constant dense<0.000000e+00> : vector<8x8xf32>
    %72 = tpu.matmul %71, %55, %cst_24 {dimension_numbers = #tpu.dot_dimension_numbers<[1], [0], [0], [1], [0, 0, 1, 1], [], []>} : vector<8x8xf32>, vector<8x8xf32>, vector<8x8xf32> -> vector<8x8xf32>
    %73 = vector.extract_strided_slice %11 {offsets = [0, 24], sizes = [8, 8], strides = [1, 1]} : vector<8x96xf32> to vector<8x8xf32>
    %74 = vector.extract_strided_slice %11 {offsets = [0, 56], sizes = [8, 8], strides = [1, 1]} : vector<8x96xf32> to vector<8x8xf32>
    %75 = vector.extract_strided_slice %11 {offsets = [0, 88], sizes = [8, 8], strides = [1, 1]} : vector<8x96xf32> to vector<8x8xf32>
    %76 = tpu.transpose %74, [1, 0] : vector<8x8xf32> -> vector<8x8xf32>
    %cst_25 = arith.constant dense<0.000000e+00> : vector<8x8xf32>
    %77 = tpu.matmul %73, %76, %cst_25 {dimension_numbers = #tpu.dot_dimension_numbers<[1], [0], [0], [1], [0, 0, 1, 1], [], []>} : vector<8x8xf32>, vector<8x8xf32>, vector<8x8xf32> -> vector<8x8xf32>
    %cst_26 = arith.constant 0.353553385 : f32
    %78 = vector.broadcast %cst_26 : f32 to vector<8x8xf32>
    %79 = arith.mulf %77, %78 : vector<8x8xf32>
    %80 = vector.broadcast %12 : vector<1x8xf32> to vector<8x8xf32>
    %81 = arith.addf %79, %80 : vector<8x8xf32>
    %cst_27 = arith.constant dense<0xFF800000> : vector<8xf32>
    %82 = vector.multi_reduction <maximumf>, %81, %cst_27 [1] : vector<8x8xf32> to vector<8xf32>
    %83 = vector.shape_cast %82 : vector<8xf32> to vector<8x1xf32>
    %84 = vector.broadcast %83 : vector<8x1xf32> to vector<8x8xf32>
    %85 = arith.subf %81, %84 : vector<8x8xf32>
    %86 = math.exp %85 : vector<8x8xf32>
    %cst_28 = arith.constant dense<0.000000e+00> : vector<8xf32>
    %87 = vector.multi_reduction <add>, %86, %cst_28 [1] : vector<8x8xf32> to vector<8xf32>
    %88 = vector.shape_cast %87 : vector<8xf32> to vector<8x1xf32>
    %89 = tpu.reciprocal %88 {approx = true} : vector<8x1xf32> -> vector<8x1xf32>
    %90 = vector.broadcast %89 : vector<8x1xf32> to vector<8x8xf32>
    %91 = arith.mulf %86, %90 : vector<8x8xf32>
    %cst_29 = arith.constant dense<0.000000e+00> : vector<8x8xf32>
    %92 = tpu.matmul %91, %75, %cst_29 {dimension_numbers = #tpu.dot_dimension_numbers<[1], [0], [0], [1], [0, 0, 1, 1], [], []>} : vector<8x8xf32>, vector<8x8xf32>, vector<8x8xf32> -> vector<8x8xf32>
    %93 = tpu.concatenate %32, %52, %72, %92 in 1 : vector<8x8xf32>, vector<8x8xf32>, vector<8x8xf32>, vector<8x8xf32> -> vector<8x32xf32>
    %94 = arith.truncf %93 : vector<8x32xf32> to vector<8x32xbf16>
    %c0_30 = arith.constant 0 : index
    %c0_31 = arith.constant 0 : index
    %c0_32 = arith.constant 0 : index
    %95 = vector.load %arg7[%c0_30, %c0_31, %c0_32] : memref<1x32x32xbf16, #tpu.memory_space<vmem>>, vector<1x32x32xbf16>
    %96 = vector.shape_cast %95 : vector<1x32x32xbf16> to vector<32x32xbf16>
    %cst_33 = arith.constant dense<0.000000e+00> : vector<8x32xf32>
    %97 = tpu.matmul %94, %96, %cst_33 {dimension_numbers = #tpu.dot_dimension_numbers<[1], [0], [0], [1], [0, 0, 1, 1], [], []>} : vector<8x32xbf16>, vector<32x32xbf16>, vector<8x32xf32> -> vector<8x32xf32>
    %c0_34 = arith.constant 0 : index
    %c0_35 = arith.constant 0 : index
    %c0_36 = arith.constant 0 : index
    %98 = vector.load %arg8[%c0_34, %c0_35, %c0_36] : memref<1x1x32xf32, #tpu.memory_space<vmem>>, vector<1x1x32xf32>
    %99 = vector.shape_cast %98 : vector<1x1x32xf32> to vector<1x32xf32>
    %100 = vector.broadcast %99 : vector<1x32xf32> to vector<8x32xf32>
    %101 = arith.addf %97, %100 : vector<8x32xf32>
    %102 = arith.addf %101, %3 : vector<8x32xf32>
    %c0_37 = arith.constant 0 : index
    %c0_38 = arith.constant 0 : index
    %c0_39 = arith.constant 0 : index
    %103 = vector.load %arg9[%c0_37, %c0_38, %c0_39] : memref<1x1x32xf32, #tpu.memory_space<vmem>>, vector<1x1x32xf32>
    %104 = vector.shape_cast %103 : vector<1x1x32xf32> to vector<1x32xf32>
    %c0_40 = arith.constant 0 : index
    %c0_41 = arith.constant 0 : index
    %c0_42 = arith.constant 0 : index
    %105 = vector.load %arg10[%c0_40, %c0_41, %c0_42] : memref<1x1x32xf32, #tpu.memory_space<vmem>>, vector<1x1x32xf32>
    %106 = vector.shape_cast %105 : vector<1x1x32xf32> to vector<1x32xf32>
    %cst_43 = arith.constant dense<0.000000e+00> : vector<8xf32>
    %107 = vector.multi_reduction <add>, %102, %cst_43 [1] : vector<8x32xf32> to vector<8xf32>
    %108 = vector.shape_cast %107 : vector<8xf32> to vector<8x1xf32>
    %cst_44 = arith.constant 3.200000e+01 : f32
    %109 = vector.broadcast %cst_44 : f32 to vector<8x1xf32>
    %110 = arith.divf %108, %109 : vector<8x1xf32>
    %111 = vector.broadcast %110 : vector<8x1xf32> to vector<8x32xf32>
    %112 = arith.subf %102, %111 : vector<8x32xf32>
    %113 = arith.mulf %112, %112 : vector<8x32xf32>
    %cst_45 = arith.constant dense<0.000000e+00> : vector<8xf32>
    %114 = vector.multi_reduction <add>, %113, %cst_45 [1] : vector<8x32xf32> to vector<8xf32>
    %115 = vector.shape_cast %114 : vector<8xf32> to vector<8x1xf32>
    %cst_46 = arith.constant 3.200000e+01 : f32
    %116 = vector.broadcast %cst_46 : f32 to vector<8x1xf32>
    %117 = arith.divf %115, %116 : vector<8x1xf32>
    %118 = vector.broadcast %110 : vector<8x1xf32> to vector<8x32xf32>
    %119 = arith.subf %102, %118 : vector<8x32xf32>
    %cst_47 = arith.constant 9.99999996E-13 : f32
    %120 = vector.broadcast %cst_47 : f32 to vector<8x1xf32>
    %121 = arith.addf %117, %120 : vector<8x1xf32>
    %122 = math.rsqrt %121 : vector<8x1xf32>
    %123 = vector.broadcast %122 : vector<8x1xf32> to vector<8x32xf32>
    %124 = arith.mulf %119, %123 : vector<8x32xf32>
    %125 = vector.broadcast %104 : vector<1x32xf32> to vector<8x32xf32>
    %126 = arith.mulf %124, %125 : vector<8x32xf32>
    %127 = vector.broadcast %106 : vector<1x32xf32> to vector<8x32xf32>
    %128 = arith.addf %126, %127 : vector<8x32xf32>
    %129 = arith.truncf %128 : vector<8x32xf32> to vector<8x32xbf16>
    %c0_48 = arith.constant 0 : index
    %c0_49 = arith.constant 0 : index
    %c0_50 = arith.constant 0 : index
    %130 = vector.load %arg11[%c0_48, %c0_49, %c0_50] : memref<1x32x64xbf16, #tpu.memory_space<vmem>>, vector<1x32x64xbf16>
    %131 = vector.shape_cast %130 : vector<1x32x64xbf16> to vector<32x64xbf16>
    %cst_51 = arith.constant dense<0.000000e+00> : vector<8x64xf32>
    %132 = tpu.matmul %129, %131, %cst_51 {dimension_numbers = #tpu.dot_dimension_numbers<[1], [0], [0], [1], [0, 0, 1, 1], [], []>} : vector<8x32xbf16>, vector<32x64xbf16>, vector<8x64xf32> -> vector<8x64xf32>
    %c0_52 = arith.constant 0 : index
    %c0_53 = arith.constant 0 : index
    %c0_54 = arith.constant 0 : index
    %133 = vector.load %arg12[%c0_52, %c0_53, %c0_54] : memref<1x1x64xf32, #tpu.memory_space<vmem>>, vector<1x1x64xf32>
    %134 = vector.shape_cast %133 : vector<1x1x64xf32> to vector<1x64xf32>
    %135 = vector.broadcast %134 : vector<1x64xf32> to vector<8x64xf32>
    %136 = arith.addf %132, %135 : vector<8x64xf32>
    %cst_55 = arith.constant 5.000000e-01 : f32
    %137 = vector.broadcast %cst_55 : f32 to vector<8x64xf32>
    %138 = arith.mulf %136, %137 : vector<8x64xf32>
    %cst_56 = arith.constant 0.707106769 : f32
    %139 = vector.broadcast %cst_56 : f32 to vector<8x64xf32>
    %140 = arith.mulf %136, %139 : vector<8x64xf32>
    %141 = math.erf %140 : vector<8x64xf32>
    %cst_57 = arith.constant 1.000000e+00 : f32
    %142 = vector.broadcast %cst_57 : f32 to vector<8x64xf32>
    %143 = arith.addf %142, %141 : vector<8x64xf32>
    %144 = arith.mulf %138, %143 : vector<8x64xf32>
    %145 = arith.truncf %144 : vector<8x64xf32> to vector<8x64xbf16>
    %c0_58 = arith.constant 0 : index
    %c0_59 = arith.constant 0 : index
    %c0_60 = arith.constant 0 : index
    %146 = vector.load %arg13[%c0_58, %c0_59, %c0_60] : memref<1x64x32xbf16, #tpu.memory_space<vmem>>, vector<1x64x32xbf16>
    %147 = vector.shape_cast %146 : vector<1x64x32xbf16> to vector<64x32xbf16>
    %cst_61 = arith.constant dense<0.000000e+00> : vector<8x32xf32>
    %148 = tpu.matmul %145, %147, %cst_61 {dimension_numbers = #tpu.dot_dimension_numbers<[1], [0], [0], [1], [0, 0, 1, 1], [], []>} : vector<8x64xbf16>, vector<64x32xbf16>, vector<8x32xf32> -> vector<8x32xf32>
    %c0_62 = arith.constant 0 : index
    %c0_63 = arith.constant 0 : index
    %c0_64 = arith.constant 0 : index
    %149 = vector.load %arg14[%c0_62, %c0_63, %c0_64] : memref<1x1x32xf32, #tpu.memory_space<vmem>>, vector<1x1x32xf32>
    %150 = vector.shape_cast %149 : vector<1x1x32xf32> to vector<1x32xf32>
    %151 = vector.broadcast %150 : vector<1x32xf32> to vector<8x32xf32>
    %152 = arith.addf %148, %151 : vector<8x32xf32>
    %153 = arith.addf %152, %128 : vector<8x32xf32>
    %c0_65 = arith.constant 0 : index
    %c0_66 = arith.constant 0 : index
    %c0_67 = arith.constant 0 : index
    %154 = vector.load %arg15[%c0_65, %c0_66, %c0_67] : memref<1x1x32xf32, #tpu.memory_space<vmem>>, vector<1x1x32xf32>
    %155 = vector.shape_cast %154 : vector<1x1x32xf32> to vector<1x32xf32>
    %c0_68 = arith.constant 0 : index
    %c0_69 = arith.constant 0 : index
    %c0_70 = arith.constant 0 : index
    %156 = vector.load %arg16[%c0_68, %c0_69, %c0_70] : memref<1x1x32xf32, #tpu.memory_space<vmem>>, vector<1x1x32xf32>
    %157 = vector.shape_cast %156 : vector<1x1x32xf32> to vector<1x32xf32>
    %cst_71 = arith.constant dense<0.000000e+00> : vector<8xf32>
    %158 = vector.multi_reduction <add>, %153, %cst_71 [1] : vector<8x32xf32> to vector<8xf32>
    %159 = vector.shape_cast %158 : vector<8xf32> to vector<8x1xf32>
    %cst_72 = arith.constant 3.200000e+01 : f32
    %160 = vector.broadcast %cst_72 : f32 to vector<8x1xf32>
    %161 = arith.divf %159, %160 : vector<8x1xf32>
    %162 = vector.broadcast %161 : vector<8x1xf32> to vector<8x32xf32>
    %163 = arith.subf %153, %162 : vector<8x32xf32>
    %164 = arith.mulf %163, %163 : vector<8x32xf32>
    %cst_73 = arith.constant dense<0.000000e+00> : vector<8xf32>
    %165 = vector.multi_reduction <add>, %164, %cst_73 [1] : vector<8x32xf32> to vector<8xf32>
    %166 = vector.shape_cast %165 : vector<8xf32> to vector<8x1xf32>
    %cst_74 = arith.constant 3.200000e+01 : f32
    %167 = vector.broadcast %cst_74 : f32 to vector<8x1xf32>
    %168 = arith.divf %166, %167 : vector<8x1xf32>
    %169 = vector.broadcast %161 : vector<8x1xf32> to vector<8x32xf32>
    %170 = arith.subf %153, %169 : vector<8x32xf32>
    %cst_75 = arith.constant 9.99999996E-13 : f32
    %171 = vector.broadcast %cst_75 : f32 to vector<8x1xf32>
    %172 = arith.addf %168, %171 : vector<8x1xf32>
    %173 = math.rsqrt %172 : vector<8x1xf32>
    %174 = vector.broadcast %173 : vector<8x1xf32> to vector<8x32xf32>
    %175 = arith.mulf %170, %174 : vector<8x32xf32>
    %176 = vector.broadcast %155 : vector<1x32xf32> to vector<8x32xf32>
    %177 = arith.mulf %175, %176 : vector<8x32xf32>
    %178 = vector.broadcast %157 : vector<1x32xf32> to vector<8x32xf32>
    %179 = arith.addf %177, %178 : vector<8x32xf32>
    %c0_76 = arith.constant 0 : index
    %c0_77 = arith.constant 0 : index
    %180 = vector.load %arg22[%c0_76, %c0_77] : memref<8x32xf32, #tpu.memory_space<vmem>>, vector<8x32xf32>
    tpu.vector_store %arg22[%c0_76, %c0_77], %179 {strides = array<i32>} : memref<8x32xf32, #tpu.memory_space<vmem>>, vector<8x32xf32>,
    %c1_i32 = arith.constant 1 : i32
    %181 = arith.cmpi eq, %arg0, %c1_i32 : i32
    %182 = arith.extui %181 : i1 to i32
    %c0_i32_78 = arith.constant 0 : i32
    %183 = arith.cmpi ne, %182, %c0_i32_78 : i32
    scf.if %183 {
      %184 = vector.extract_strided_slice %179 {offsets = [0, 0], sizes = [1, 32], strides = [1, 1]} : vector<8x32xf32> to vector<1x32xf32>
      %185 = arith.truncf %184 : vector<1x32xf32> to vector<1x32xbf16>
      %c0_79 = arith.constant 0 : index
      %c0_80 = arith.constant 0 : index
      %186 = vector.load %arg17[%c0_79, %c0_80] : memref<32x32xbf16, #tpu.memory_space<vmem>>, vector<32x32xbf16>
      %cst_81 = arith.constant dense<0.000000e+00> : vector<1x32xf32>
      %187 = tpu.matmul %185, %186, %cst_81 {dimension_numbers = #tpu.dot_dimension_numbers<[1], [0], [0], [1], [0, 0, 1, 1], [], []>} : vector<1x32xbf16>, vector<32x32xbf16>, vector<1x32xf32> -> vector<1x32xf32>
      %c0_82 = arith.constant 0 : index
      %c0_83 = arith.constant 0 : index
      %188 = vector.load %arg18[%c0_82, %c0_83] : memref<1x32xf32, #tpu.memory_space<vmem>>, vector<1x32xf32>
      %189 = arith.addf %187, %188 : vector<1x32xf32>
      %190 = math.tanh %189 : vector<1x32xf32>
      %191 = arith.truncf %190 : vector<1x32xf32> to vector<1x32xbf16>
      %c0_84 = arith.constant 0 : index
      %c0_85 = arith.constant 0 : index
      %192 = vector.load %arg19[%c0_84, %c0_85] : memref<32x128xbf16, #tpu.memory_space<vmem>>, vector<32x128xbf16>
      %cst_86 = arith.constant dense<0.000000e+00> : vector<1x128xf32>
      %193 = tpu.matmul %191, %192, %cst_86 {dimension_numbers = #tpu.dot_dimension_numbers<[1], [0], [0], [1], [0, 0, 1, 1], [], []>} : vector<1x32xbf16>, vector<32x128xbf16>, vector<1x128xf32> -> vector<1x128xf32>
      %c0_87 = arith.constant 0 : index
      %c0_88 = arith.constant 0 : index
      %194 = vector.load %arg20[%c0_87, %c0_88] : memref<1x128xf32, #tpu.memory_space<vmem>>, vector<1x128xf32>
      %195 = arith.addf %193, %194 : vector<1x128xf32>
      %c0_89 = arith.constant 0 : index
      %c0_90 = arith.constant 0 : index
      %196 = vector.load %arg21[%c0_89, %c0_90] : memref<1x128xf32, #tpu.memory_space<vmem>>, vector<1x128xf32>
      tpu.vector_store %arg21[%c0_89, %c0_90], %195 {strides = array<i32>} : memref<1x128xf32, #tpu.memory_space<vmem>>, vector<1x128xf32>,
    } else {
    }
    return
  }
  func.func @transform_0(%arg0: i32) -> (i32, i32) {
    %c0_i32 = arith.constant 0 : i32
    %c0_i32_0 = arith.constant 0 : i32
    %c0_i32_1 = arith.constant 0 : i32
    return %c0_i32, %c0_i32_0 : i32, i32
  }
  func.func @transform_1(%arg0: i32) -> (i32, i32) {
    %c0_i32 = arith.constant 0 : i32
    %c0_i32_0 = arith.constant 0 : i32
    %c0_i32_1 = arith.constant 0 : i32
    return %c0_i32, %c0_i32_0 : i32, i32
  }
  func.func @transform_2(%arg0: i32) -> (i32, i32) {
    %c0_i32 = arith.constant 0 : i32
    %c0_i32_0 = arith.constant 0 : i32
    %c0_i32_1 = arith.constant 0 : i32
    return %c0_i32, %c0_i32_0 : i32, i32
  }
  func.func @transform_3(%arg0: i32) -> (i32, i32) {
    %c0_i32 = arith.constant 0 : i32
    %c0_i32_0 = arith.constant 0 : i32
    %c0_i32_1 = arith.constant 0 : i32
    return %c0_i32, %c0_i32_0 : i32, i32
  }
  func.func @transform_4(%arg0: i32) -> (i32, i32, i32) {
    %c0_i32 = arith.constant 0 : i32
    %c0_i32_0 = arith.constant 0 : i32
    %c0_i32_1 = arith.constant 0 : i32
    return %arg0, %c0_i32, %c0_i32_0 : i32, i32, i32
  }
  func.func @transform_5(%arg0: i32) -> (i32, i32, i32) {
    %c0_i32 = arith.constant 0 : i32
    %c0_i32_0 = arith.constant 0 : i32
    %c0_i32_1 = arith.constant 0 : i32
    return %arg0, %c0_i32, %c0_i32_0 : i32, i32, i32
  }
  func.func @transform_6(%arg0: i32) -> (i32, i32, i32) {
    %c0_i32 = arith.constant 0 : i32
    %c0_i32_0 = arith.constant 0 : i32
    %c0_i32_1 = arith.constant 0 : i32
    return %arg0, %c0_i32, %c0_i32_0 : i32, i32, i32
  }
  func.func @transform_7(%arg0: i32) -> (i32, i32, i32) {
    %c0_i32 = arith.constant 0 : i32
    %c0_i32_0 = arith.constant 0 : i32
    %c0_i32_1 = arith.constant 0 : i32
    return %arg0, %c0_i32, %c0_i32_0 : i32, i32, i32
  }
  func.func @transform_8(%arg0: i32) -> (i32, i32, i32) {
    %c0_i32 = arith.constant 0 : i32
    %c0_i32_0 = arith.constant 0 : i32
    %c0_i32_1 = arith.constant 0 : i32
    return %arg0, %c0_i32, %c0_i32_0 : i32, i32, i32
  }
  func.func @transform_9(%arg0: i32) -> (i32, i32, i32) {
    %c0_i32 = arith.constant 0 : i32
    %c0_i32_0 = arith.constant 0 : i32
    %c0_i32_1 = arith.constant 0 : i32
    return %arg0, %c0_i32, %c0_i32_0 : i32, i32, i32
  }
  func.func @transform_10(%arg0: i32) -> (i32, i32, i32) {
    %c0_i32 = arith.constant 0 : i32
    %c0_i32_0 = arith.constant 0 : i32
    %c0_i32_1 = arith.constant 0 : i32
    return %arg0, %c0_i32, %c0_i32_0 : i32, i32, i32
  }
  func.func @transform_11(%arg0: i32) -> (i32, i32, i32) {
    %c0_i32 = arith.constant 0 : i32
    %c0_i32_0 = arith.constant 0 : i32
    %c0_i32_1 = arith.constant 0 : i32
    return %arg0, %c0_i32, %c0_i32_0 : i32, i32, i32
  }
  func.func @transform_12(%arg0: i32) -> (i32, i32, i32) {
    %c0_i32 = arith.constant 0 : i32
    %c0_i32_0 = arith.constant 0 : i32
    %c0_i32_1 = arith.constant 0 : i32
    return %arg0, %c0_i32, %c0_i32_0 : i32, i32, i32
  }
  func.func @transform_13(%arg0: i32) -> (i32, i32, i32) {
    %c0_i32 = arith.constant 0 : i32
    %c0_i32_0 = arith.constant 0 : i32
    %c0_i32_1 = arith.constant 0 : i32
    return %arg0, %c0_i32, %c0_i32_0 : i32, i32, i32
  }
  func.func @transform_14(%arg0: i32) -> (i32, i32, i32) {
    %c0_i32 = arith.constant 0 : i32
    %c0_i32_0 = arith.constant 0 : i32
    %c0_i32_1 = arith.constant 0 : i32
    return %arg0, %c0_i32, %c0_i32_0 : i32, i32, i32
  }
  func.func @transform_15(%arg0: i32) -> (i32, i32, i32) {
    %c0_i32 = arith.constant 0 : i32
    %c0_i32_0 = arith.constant 0 : i32
    %c0_i32_1 = arith.constant 0 : i32
    return %arg0, %c0_i32, %c0_i32_0 : i32, i32, i32
  }
  func.func @transform_16(%arg0: i32) -> (i32, i32) {
    %c0_i32 = arith.constant 0 : i32
    %c0_i32_0 = arith.constant 0 : i32
    %c0_i32_1 = arith.constant 0 : i32
    return %c0_i32, %c0_i32_0 : i32, i32
  }
  func.func @transform_17(%arg0: i32) -> (i32, i32) {
    %c0_i32 = arith.constant 0 : i32
    %c0_i32_0 = arith.constant 0 : i32
    %c0_i32_1 = arith.constant 0 : i32
    return %c0_i32, %c0_i32_0 : i32, i32
  }
  func.func @transform_18(%arg0: i32) -> (i32, i32) {
    %c0_i32 = arith.constant 0 : i32
    %c0_i32_0 = arith.constant 0 : i32
    %c0_i32_1 = arith.constant 0 : i32
    return %c0_i32, %c0_i32_0 : i32, i32
  }
  func.func @transform_19(%arg0: i32) -> (i32, i32) {
    %c0_i32 = arith.constant 0 : i32
    %c0_i32_0 = arith.constant 0 : i32
    %c0_i32_1 = arith.constant 0 : i32
    return %c0_i32, %c0_i32_0 : i32, i32
  }
  func.func @transform_20(%arg0: i32) -> (i32, i32) {
    %c0_i32 = arith.constant 0 : i32
    %c0_i32_0 = arith.constant 0 : i32
    %c0_i32_1 = arith.constant 0 : i32
    return %c0_i32, %c0_i32_0 : i32, i32
  }
}

</mosaic_0001>

<bundles_post_ra>
// kernel: bert_class_forward.1
= control target key start
LH: loop header
LB: loop body
LE: loop exit
PB: predicated region body
PF: predicated region fallthrough
CT: control target
= control target key end

     0   :  { %s2843_s0 = inlined_call_operand.vmem [shape: f32[8,32], index: 0, kind: input, shape index: {}]   ;;  %s2844_s1 = inlined_call_operand.vmem [shape: f32[1,8], index: 1, kind: input, shape index: {}]   ;;  %s2845_s2 = inlined_call_operand.vmem [shape: f32[1,32], index: 2, kind: input, shape index: {}]   ;;  %s2846_s3 = inlined_call_operand.vmem [shape: f32[1,32], index: 3, kind: input, shape index: {}]   ;;  %s2847_s4 = inlined_call_operand.vmem [shape: bf16[2,32,96], index: 4, kind: input, shape index: {}]   ;;  %s2848_s5 = inlined_call_operand.vmem [shape: f32[2,1,96], index: 5, kind: input, shape index: {}]   ;;  %s2849_s6 = inlined_call_operand.vmem [shape: bf16[2,32,32], index: 6, kind: input, shape index: {}]   ;;  %s2850_s7 = inlined_call_operand.vmem [shape: f32[2,1,32], index: 7, kind: input, shape index: {}]   ;;  %s2851_s8 = inlined_call_operand.vmem [shape: f32[2,1,32], index: 8, kind: input, shape index: {}]   ;;  %s2852_s9 = inlined_call_operand.vmem [shape: f32[2,1,32], index: 9, kind: input, shape index: {}]   ;;  %s2853_s10 = inlined_call_operand.vmem [shape: bf16[2,32,64], index: 10, kind: input, shape index: {}]   ;;  %s2854_s11 = inlined_call_operand.vmem [shape: f32[2,1,64], index: 11, kind: input, shape index: {}]   ;;  %s2855_s12 = inlined_call_operand.vmem [shape: bf16[2,64,32], index: 12, kind: input, shape index: {}]   ;;  %s2856_s13 = inlined_call_operand.vmem [shape: f32[2,1,32], index: 13, kind: input, shape index: {}]   ;;  %s2857_s14 = inlined_call_operand.vmem [shape: f32[2,1,32], index: 14, kind: input, shape index: {}]   ;;  %s2858_s15 = inlined_call_operand.vmem [shape: f32[2,1,32], index: 15, kind: input, shape index: {}]   ;;  %s2859_s16 = inlined_call_operand.vmem [shape: bf16[32,32], index: 16, kind: input, shape index: {}]   ;;  %s2860_s17 = inlined_call_operand.vmem [shape: f32[1,32], index: 17, kind: input, shape index: {}]   ;;  %s2861_s18 = inlined_call_operand.vmem [shape: bf16[32,128], index: 18, kind: input, shape index: {}]   ;;  %s2862_s19 = inlined_call_operand.vmem [shape: f32[1,128], index: 19, kind: input, shape index: {}]   ;;  %s2863_s20 = inlined_call_operand.hbm [shape: f32[1,128], index: 20, kind: output, shape index: {}]  }
   0x1   :  { %2867 = sst [smem:[#allocation7_spill]] %s2843_s0 }
   0x2   :  { %2868 = sst [smem:[#allocation8_spill]] %s2844_s1 }
   0x3   :  { %2869 = sst [smem:[#allocation9_spill]] %s2845_s2 }
   0x4   :  { %2870 = sst [smem:[#allocation10_spill]] %s2846_s3 }
   0x5   :  { %2871 = sst [smem:[#allocation11_spill]] %s2847_s4 }
   0x6   :  { %2872 = sst [smem:[#allocation12_spill]] %s2849_s6 }
   0x7   :  { %2873 = sst [smem:[#allocation13_spill]] %s2859_s16 }
   0x8   :  { %2874 = sst [smem:[#allocation14_spill]] %s2860_s17 }
   0x9   :  { %2875 = sst [smem:[#allocation15_spill]] %s2861_s18 }
   0xa   :  { %2876 = sst [smem:[#allocation16_spill]] %s2862_s19 }
   0xb   :  { %2877 = sst [smem:[#allocation17_spill]] %s2863_s20 }
   0xc   :  { %25 = vsyncpa [#allocation4], 0  ;;  %s2580_s1 = smov 0  }
   0xd LB: > { %2878 = sst [smem:[#allocation6_spill]] %s2454_s1  ;;  %s2586_s22 = sadd.s32 4294967295, %s2454_s1   ;;  %s2454_s1 = sphi %s2580_s1, %s31_s1  }
   0xe   : > { %p2157_p0 = scmp.ge.s32.totalorder %s2454_s1, 1  ;;  %p652_p1 = scmp.lt.s32.totalorder %s2454_s1, 3 }
  0x10   : > { %p653_p2 = pnand %p2157_p0, %p652_p1 }
  0x11   : > { %p744_p3 = scmp.lt.s32.totalorder (!%p653_p2), %s2586_s22, 1  ;;  %s2879_s28 = sld [smem:[#allocation11_spill]] (!%p653_p2) }
  0x12   : > { %656 = sbr.rel (%p653_p2) target bundleno = 3678 (0xe5e), region = 100  ;;  %s2880_s6 = sld [smem:[#allocation12_spill]] (!%p653_p2) }
  0x13   : > { %p2166_p4 = scmp.ne.s32.totalorder (!%p653_p2), %s2586_s22, 0 }
  0x17   : > { %s2592_s23 = scalar_select %p744_p3, %s2586_s22, 1 }
  0x18   : > { %s2881_s1 = sld [smem:[#allocation7_spill]] (!%p2166_p4) }
  0x19   : > { %s2215_s24 = sshll.u32 %s2592_s23, 4  ;;  %s2218_s16 = sshll.u32 %s2592_s23, 5 }
  0x1a   : > { %s2602_s4 = scalar_lea.vmem %s2879_s28, %s2215_s24  ;;  %s2607_s0 = scalar_lea.vmem %s2880_s6, %s2215_s24 }
  0x1b   : > { %s2624_s28 = scalar_lea.vmem %s2853_s10, %s2215_s24  ;;  %s773_s6 = scalar_lea.vmem %s2854_s11, %s2592_s23 }
  0x1c   : > { %s2634_s20 = scalar_lea.vmem %s2855_s12, %s2218_s16  ;;  %s781_s2 = scalar_lea.vmem %s2856_s13, %s2592_s23 }
  0x1d   : > { %s784_s26 = scalar_lea.vmem %s2857_s14, %s2592_s23  ;;  %s787_s18 = scalar_lea.vmem %s2858_s15, %s2592_s23 }
  0x1e   : > { %792 = sbr.rel (%p2166_p4) target bundleno = 345 (0x159), region = 104  ;;  %s2882_s21 = sld [smem:[#allocation9_spill]] (!%p2166_p4) }
  0x1f   : > { %s2883_s25 = sld [smem:[#allocation10_spill]] (!%p2166_p4) }
  0x23   : > { %v793_v0 = vld [vmem:[%s2881_s1] sm:$0xff]  ;;  %vm796_vm0 = vcmask 261120  }
  0x24   : > { %v797_v1 = vsel %vm796_vm0, %v793_v0, 0.0  ;;  %v2167_v11 = vld [vmem:[%s2882_s21] ss:$0 sm:$0xff] }
  0x25   : > { %798 = vadd.xlane.f32.xlu0 %v797_v1  ;;  %v2168_v13 = vld [vmem:[%s2883_s25] ss:$0 sm:$0xff] }
  0xae   : > { %v799_v2 = vpop.xlane.xlu0 %798 }
  0xaf   : > { %v801_v3 = vmul.f32 0.03125, %v799_v2 }
  0xb1   : > { %v802_v4 = vsub.f32 %v793_v0, %v801_v3 }
  0xb3   : > { %v803_v5 = vmul.f32 %v802_v4, %v802_v4 }
  0xb5   : > { %v804_v6 = vsel %vm796_vm0, %v803_v5, 0.0 }
  0xb6   : > { %805 = vadd.xlane.f32.xlu0 %v804_v6 }
 0x13f   : > { %v806_v7 = vpop.xlane.xlu0 %805 }
 0x140   : > { %v807_v8 = vmul.f32 0.03125, %v806_v7 }
 0x142   : > { %v808_v9 = vadd.f32 1e-12, %v807_v8 }
 0x144   : > { %2380 = vrsqrt.f32 %v808_v9 }
 0x151   : > { %v2381_v10 = vpop.eup %2380 }
 0x152   : > { %v810_v12 = vmul.f32 %v2381_v10, %v802_v4 }
 0x154   : > { %v817_v14 = vmul.f32 %v2167_v11, %v810_v12 }
 0x156   : > { %v824_v15 = vadd.f32 %v2168_v13, %v817_v14 }
 0x158   : > { %825 = vst.msk [vmem:[#allocation2] sm:$0xff] %vm796_vm0, %v824_v15 }
 0x159 PF: > { %v2382_v16 = vld [vmem:[%s2602_s4 + $0x8] sm:$0xff]   ;;  %v2456_v17 = vmov 0.0   ;;  %v2383_v18 = vld [vmem:[%s2602_s4] sm:$0xff]   ;;  %vm2457_vm1 = vmmov 0   ;;  %vm851_vm2 = vcmask 261120   ;;  %s2884_s27 = scalar_lea.vmem %s2848_s5, %s2592_s23  ;;  %s2458_s29 = smov 64  }
 0x15a   : > { %2255 = vmatprep.subr.bf16.mxu0 %v2456_v17  ;;  %2268 = vmatprep.subr.mxu1 %v2456_v17  ;;  %v2169_v21 = vld [vmem:[%s2884_s27] ss:$0 sm:$0xff]  ;;  %s2459_s30 = smov 96   ;;  %s2460_s1 = smov 88   ;;  %vm899_vm3 = vcmask 64512   ;;  %vm1583_vm4 = vcmask 130048  }
 0x15b   : > { %2256 = vmatpush3.bf16.msra.mxu0 %v2382_v16  ;;  %2259 = vmatprep.mubr.msk.bf16.mxu0 %vm2457_vm1, %v2456_v17  ;;  %s2461_s16 = smov 120   ;;  %s2462_s3 = smov 80   ;;  %vm1585_vm5 = vcmask 195584   ;;  %vm1797_vm6 = vcmask 523264  }
 0x15c   : > { %2257 = vmatprep.subr.bf16.mxu0 %v2456_v17  ;;  %2270 = vmatprep.mubr.msk.f32.mxu1 %vm2457_vm1, %v2456_v17  ;;  %s2885_s19 = sld [smem:[#allocation8_spill]]  ;;  %s2463_s25 = smov 72  }
 0x15d   : > { %s2464_s4 = smov 112   ;;  %s2465_s24 = smov 104  }
 0x15e   : > { %s2466_s27 = smov 56   ;;  %s2886_s17 = scalar_lea.vmem %s2850_s7, %s2592_s23 }
 0x15f   : > { %v2667_v19 = vld [vmem:[#allocation2] sm:$0xff]  ;;  %2258 = vmatpush3.bf16.msra.mxu0 %v2383_v18  ;;  %p2204_p5 = scmp.ne.s32.totalorder %s2586_s22, 1 }
 0x160   : > { %v827_v20 = vpack.c.bf16 %v2667_v19, %v2667_v19  ;;  %2263 = vmatprep.subr.mxu0 %v2456_v17 }
 0x162   : > { %2260 = vmatmul.mubr.msk.bf16.vlgmr.msra.gmra.mxu0 %vm851_vm2, %v827_v20  ;;  %v2175_v30 = vld [vmem:[%s2885_s19] ss:$0 sm:$0xff] }
 0x163   : > { %2265 = vmatprep.mubr.msk.f32.mxu0 %vm2457_vm1, %v2456_v17 }
 0x222   : > { %v889_v22 = vpop.f32.mrf.mxu0 }
 0x223   : > { %v2683_v23 = vadd.f32 %v2169_v21, %v889_v22 }
 0x224   : > { %v2261_v24 = vpop.f32.mrf.mxu0 }
 0x225   : > { %993 = vrot.lane.b32.xlu1 %v2683_v23, %s2458_s29  ;;  %897 = vrot.lane.b32.xlu0 %v2683_v23, %s2459_s30  ;;  %s2467_s29 = smov 40   ;;  %s2468_s30 = smov 48  }
 0x226   : > { %v892_v25 = vpop.f32.mrf.mxu0 }
 0x228   : > { %v2262_v26 = vpop.f32.mrf.mxu0 }
 0x229   : > { %1071 = vrot.lane.b32.xlu1 %v2683_v23, %s2460_s1  ;;  %s2469_s1 = smov 8  }
 0x22d   : > { %1069 = vrot.lane.b32.xlu1 %v2683_v23, %s2461_s16  ;;  %s2470_s16 = smov 16  }
 0x231   : > { %1238 = vrot.lane.b32.xlu1 %v2683_v23, %s2462_s3  ;;  %s2471_s3 = smov 24  }
 0x297   : > { %v994_v27 = vpop.permute.xlu1 %993  ;;  %v898_v28 = vpop.permute.xlu0 %897 }
 0x298   : > { %2264 = vmatpush3.xpose.msk.msra.mxu0 %vm899_vm3, %v898_v28  ;;  %2269 = vmatpush3.msra.mxu1 %v994_v27 }
 0x299   : > { %2273 = vmatprep.subr.mxu1 %v2456_v17  ;;  %2278 = vmatprep.subr.mxu0 %v2456_v17 }
 0x29b   : > { %2266 = vmatmul.mubr.msk.f32.vlgmr.msra.gmra.mxu0 %vm899_vm3, %v2683_v23  ;;  %v1072_v40 = vpop.permute.xlu1 %1071 }
 0x29c   : > { %2280 = vmatprep.mubr.msk.f32.mxu0 %vm2457_vm1, %v2456_v17 }
 0x29f   : > { %v1070_v41 = vpop.permute.xlu1 %1069 }
 0x2a3   : > { %v1239_v42 = vpop.permute.xlu1 %1238 }
 0x35b   : > { %v970_v29 = vpop.f32.mrf.mxu0 }
 0x35c   : > { %v974_v31 = vmul.f32 0.35355338, %v970_v29 }
 0x35d   : > { %v2267_v32 = vpop.f32.mrf.mxu0 }
 0x35e   : > { %v981_v33 = vadd.f32 %v2175_v30, %v974_v31  ;;  %v2384_v31 = vld [vmem:[%s2607_s0 + $0x8] sm:$0xff]   ;;  %v2385_v32 = vld [vmem:[%s2607_s0] sm:$0xff]  }
 0x360   : > { %v982_v34 = vsel %vm899_vm3, %v981_v33, -inf }
 0x361   : > { %983 = vmax.xlane.f32.xlu0 %v982_v34 }
 0x377   : > { %1405 = vrot.lane.b32.xlu0 %v2683_v23, %s2463_s25  ;;  %s2890_s25 = sld [smem:[#allocation15_spill]] (!%p2204_p5) }
 0x3ea   : > { %v984_v35 = vpop.xlane.xlu0 %983 }
 0x3eb   : > { %v985_v36 = vsub.f32 %v981_v33, %v984_v35 }
 0x3ed   : > { %v986_v37 = vmul.f32 1.442695, %v985_v36 }
 0x3ee   : > { %v1406_v47 = vpop.permute.xlu0 %1405 }
 0x3ef   : > { %2392 = vpow2.f32 %v986_v37 }
 0x3fc   : > { %v2393_v38 = vpop.eup %2392 }
 0x3fd   : > { %v988_v39 = vsel %vm899_vm3, %v2393_v38, 0.0 }
 0x3fe   : > { %989 = vadd.xlane.f32.xlu1 %v988_v39 }
 0x40f   : > { %1236 = vrot.lane.b32.xlu1 %v2683_v23, %s2464_s4  ;;  %s2887_s4 = scalar_lea.vmem %s2851_s8, %s2592_s23 }
 0x413   : > { %1403 = vrot.lane.b32.xlu1 %v2683_v23, %s2465_s24 }
 0x487   : > { %v990_v43 = vpop.xlane.xlu1 %989 }
 0x488   : > { %2394 = vrcp.f32 %v990_v43 }
 0x48b   : > { %v1237_v46 = vpop.permute.xlu1 %1236 }
 0x48f   : > { %v1404_v48 = vpop.permute.xlu1 %1403 }
 0x495   : > { %v2395_v44 = vpop.eup %2394 }
 0x496   : > { %v992_v45 = vmul.f32 %v2395_v44, %v2393_v38 }
 0x498   : > { %2271 = vmatmul.mubr.msk.f32.vlgmr.msra.gmra.mxu1 %vm899_vm3, %v992_v45 }
 0x499   : > { %2274 = vmatpush3.xpose.msk.msra.mxu1 %vm899_vm3, %v1072_v40  ;;  %2275 = vmatprep.mubr.msk.f32.mxu1 %vm2457_vm1, %v2456_v17 }
 0x49a   : > { %2283 = vmatprep.subr.mxu1 %v2456_v17 }
 0x49c   : > { %2276 = vmatmul.mubr.msk.f32.vlgmr.msra.gmra.mxu1 %vm899_vm3, %v1070_v41 }
 0x49d   : > { %2284 = vmatpush3.xpose.msk.msra.mxu1 %vm899_vm3, %v1239_v42  ;;  %2285 = vmatprep.mubr.msk.f32.mxu1 %vm2457_vm1, %v2456_v17 }
 0x49e   : > { %2293 = vmatprep.subr.mxu1 %v2456_v17 }
 0x4a0   : > { %2286 = vmatmul.mubr.msk.f32.vlgmr.msra.gmra.mxu1 %vm899_vm3, %v1237_v46  ;;  %v2186_v46 = vld [vmem:[%s2886_s17] ss:$0 sm:$0xff]  ;;  %s2889_s17 = sld [smem:[#allocation13_spill]] (!%p2204_p5) }
 0x4a1   : > { %2294 = vmatpush3.xpose.msk.msra.mxu1 %vm899_vm3, %v1406_v47  ;;  %2295 = vmatprep.mubr.msk.f32.mxu1 %vm2457_vm1, %v2456_v17 }
 0x4a2   : > { %2303 = vmatprep.subr.bf16.mxu1 %v2456_v17 }
 0x4a4   : > { %2296 = vmatmul.mubr.msk.f32.vlgmr.msra.gmra.mxu1 %vm899_vm3, %v1404_v48 }
 0x4a5   : > { %2307 = vmatprep.mubr.msk.bf16.mxu1 %vm2457_vm1, %v2456_v17  ;;  %2304 = vmatpush3.bf16.msra.mxu1 %v2384_v31 }
 0x4a6   : > { %2305 = vmatprep.subr.bf16.mxu1 %v2456_v17 }
 0x4a9   : > { %2306 = vmatpush3.bf16.msra.mxu1 %v2385_v32 }
 0x4aa   : > { %2319 = vmatprep.subr.bf16.mxu1 %v2456_v17 }
 0x558   : > { %v2723_v49 = vpop.f32.mrf.mxu1 }
 0x55a   : > { %v2272_v50 = vpop.f32.mrf.mxu1 }
 0x55c   : > { %v1143_v51 = vpop.f32.mrf.mxu1 }
 0x55d   : > { %v1147_v52 = vmul.f32 0.35355338, %v1143_v51 }
 0x55e   : > { %v2277_v53 = vpop.f32.mrf.mxu1 }
 0x55f   : > { %v1148_v54 = vadd.f32 %v2175_v30, %v1147_v52 }
 0x560   : > { %v1310_v55 = vpop.f32.mrf.mxu1 }
 0x561   : > { %v1314_v56 = vmul.f32 0.35355338, %v1310_v55  ;;  %v1149_v57 = vsel %vm899_vm3, %v1148_v54, -inf }
 0x562   : > { %1150 = vmax.xlane.f32.xlu1 %v1149_v57  ;;  %v2287_v58 = vpop.f32.mrf.mxu1 }
 0x563   : > { %v1315_v59 = vadd.f32 %v2175_v30, %v1314_v56 }
 0x564   : > { %v1477_v60 = vpop.f32.mrf.mxu1 }
 0x565   : > { %v1481_v61 = vmul.f32 0.35355338, %v1477_v60  ;;  %v1316_v62 = vsel %vm899_vm3, %v1315_v59, -inf  ;;  %v2387_v60 = vld [vmem:[%s2624_s28] sm:$0xff]  }
 0x566   : > { %1317 = vmax.xlane.f32.xlu0 %v1316_v62  ;;  %v2297_v63 = vpop.f32.mrf.mxu1 }
 0x567   : > { %v1482_v0 = vadd.f32 %v2175_v30, %v1481_v61 }
 0x569   : > { %v1483_v1 = vsel %vm899_vm3, %v1482_v0, -inf }
 0x56a   : > { %1484 = vmax.xlane.f32.xlu1 %v1483_v1 }
 0x57b   : > { %1160 = vrot.lane.b32.xlu1 %v2683_v23, %s2466_s27 }
 0x5eb   : > { %v1151_v2 = vpop.xlane.xlu1 %1150 }
 0x5ec   : > { %v1152_v3 = vsub.f32 %v1148_v54, %v1151_v2 }
 0x5ee   : > { %v1153_v4 = vmul.f32 1.442695, %v1152_v3 }
 0x5ef   : > { %v1318_v5 = vpop.xlane.xlu0 %1317 }
 0x5f0   : > { %2396 = vpow2.f32 %v1153_v4  ;;  %v1319_v6 = vsub.f32 %v1315_v59, %v1318_v5  ;;  %v2386_v59 = vld [vmem:[%s2624_s28 + $0x8] sm:$0xff]   ;;  %s2888_s28 = scalar_lea.vmem %s2852_s9, %s2592_s23 }
 0x5f1   : > { %v2191_v2 = vld [vmem:[%s2888_s28] ss:$0 sm:$0xff] }
 0x5f2   : > { %v1320_v7 = vmul.f32 1.442695, %v1319_v6  ;;  %v2388_v6 = vld [vmem:[%s2634_s20 + $0x18] sm:$0xff]  }
 0x5f3   : > { %v1485_v8 = vpop.xlane.xlu1 %1484 }
 0x5f4   : > { %2398 = vpow2.f32 %v1320_v7  ;;  %v1486_v9 = vsub.f32 %v1482_v0, %v1485_v8  ;;  %v2190_v0 = vld [vmem:[%s2887_s4] ss:$0 sm:$0xff]  ;;  %v2389_v7 = vld [vmem:[%s2634_s20 + $0x10] sm:$0xff]   ;;  %v2390_v8 = vld [vmem:[%s2634_s20 + $0x8] sm:$0xff]  }
 0x5f6   : > { %v1487_v10 = vmul.f32 1.442695, %v1486_v9  ;;  %v2391_v9 = vld [vmem:[%s2634_s20] sm:$0xff]  }
 0x5f7   : > { %v1161_v11 = vpop.permute.xlu1 %1160 }
 0x5f8   : > { %2400 = vpow2.f32 %v1487_v10  ;;  %2279 = vmatpush3.msra.mxu0 %v1161_v11  ;;  %v2192_v10 = vld [vmem:[%s773_s6] ss:$0 sm:$0xff] }
 0x5f9   : > { %2288 = vmatprep.subr.mxu0 %v2456_v17 }
 0x5fd   : > { %v2397_v12 = vpop.eup %2396 }
 0x5fe   : > { %v1155_v13 = vsel %vm899_vm3, %v2397_v12, 0.0 }
 0x5ff   : > { %1156 = vadd.xlane.f32.xlu1 %v1155_v13 }
 0x601   : > { %v2399_v14 = vpop.eup %2398 }
 0x602   : > { %v1322_v15 = vsel %vm899_vm3, %v2399_v14, 0.0 }
 0x603   : > { %1323 = vadd.xlane.f32.xlu1 %v1322_v15 }
 0x605   : > { %v2401_v16 = vpop.eup %2400 }
 0x606   : > { %v1489_v18 = vsel %vm899_vm3, %v2401_v16, 0.0 }
 0x607   : > { %1490 = vadd.xlane.f32.xlu0 %v1489_v18 }
 0x614   : > { %1494 = vrot.lane.b32.xlu1 %v2683_v23, %s2467_s29  ;;  %s2891_s29 = sld [smem:[#allocation14_spill]] (!%p2204_p5) }
 0x61d   : > { %1327 = vrot.lane.b32.xlu0 %v2683_v23, %s2468_s30 }
 0x688   : > { %v1157_v20 = vpop.xlane.xlu1 %1156 }
 0x689   : > { %2402 = vrcp.f32 %v1157_v20 }
 0x68c   : > { %v1324_v21 = vpop.xlane.xlu1 %1323 }
 0x68d   : > { %2404 = vrcp.f32 %v1324_v21 }
 0x690   : > { %v1491_v22 = vpop.xlane.xlu0 %1490  ;;  %v1495_v28 = vpop.permute.xlu1 %1494 }
 0x691   : > { %2406 = vrcp.f32 %v1491_v22 }
 0x694   : > { %v1328_v26 = vpop.permute.xlu0 %1327 }
 0x696   : > { %v2403_v24 = vpop.eup %2402 }
 0x697   : > { %v1159_v25 = vmul.f32 %v2403_v24, %v2397_v12  ;;  %v2196_v24 = vld [vmem:[%s781_s2] ss:$0 sm:$0xff] }
 0x699   : > { %2281 = vmatmul.mubr.msk.f32.vlgmr.msra.gmra.mxu0 %vm899_vm3, %v1159_v25 }
 0x69a   : > { %v2405_v27 = vpop.eup %2404  ;;  %2289 = vmatpush3.msra.mxu0 %v1328_v26  ;;  %2290 = vmatprep.mubr.msk.f32.mxu0 %vm2457_vm1, %v2456_v17 }
 0x69b   : > { %2298 = vmatprep.subr.mxu0 %v2456_v17  ;;  %v1326_v23 = vmul.f32 %v2405_v27, %v2399_v14 }
 0x69d   : > { %2291 = vmatmul.mubr.msk.f32.vlgmr.msra.gmra.mxu0 %vm899_vm3, %v1326_v23 }
 0x69e   : > { %v2407_v29 = vpop.eup %2406  ;;  %2299 = vmatpush3.msra.mxu0 %v1495_v28  ;;  %2300 = vmatprep.mubr.msk.f32.mxu0 %vm2457_vm1, %v2456_v17 }
 0x69f   : > { %v1493_v30 = vmul.f32 %v2407_v29, %v2401_v16  ;;  %2311 = vmatprep.subr.bf16.mxu0 %v2456_v17 }
 0x6a1   : > { %2301 = vmatmul.mubr.msk.f32.vlgmr.msra.gmra.mxu0 %vm899_vm3, %v1493_v30 }
 0x6a2   : > { %2315 = vmatprep.mubr.msk.bf16.mxu0 %vm2457_vm1, %v2456_v17  ;;  %2312 = vmatpush3.bf16.msra.mxu0 %v2386_v59 }
 0x6a3   : > { %2313 = vmatprep.subr.bf16.mxu0 %v2456_v17 }
 0x6a6   : > { %2314 = vmatpush3.bf16.msra.mxu0 %v2387_v60 }
 0x759   : > { %v1232_v33 = vpop.f32.mrf.mxu0 }
 0x75a   : > { %1571 = vrot.lane.b32.xlu1 %v1232_v33, %s2469_s1  ;;  %s2892_s1 = sld [smem:[#allocation16_spill]] (!%p2204_p5) }
 0x75b   : > { %v2282_v34 = vpop.f32.mrf.mxu0 }
 0x75d   : > { %v1399_v35 = vpop.f32.mrf.mxu0 }
 0x75e   : > { %1575 = vrot.lane.b32.xlu0 %v1399_v35, %s2470_s16 }
 0x75f   : > { %v2292_v36 = vpop.f32.mrf.mxu0 }
 0x761   : > { %v1566_v37 = vpop.f32.mrf.mxu0 }
 0x762   : > { %1579 = vrot.lane.b32.xlu1 %v1566_v37, %s2471_s3 }
 0x763   : > { %v2302_v38 = vpop.f32.mrf.mxu0 }
 0x7cc   : > { %v1572_v39 = vpop.permute.xlu1 %1571 }
 0x7cd   : > { %v1582_v41 = vsel %vm899_vm3, %v2723_v49, %v1572_v39 }
 0x7d0   : > { %v1576_v40 = vpop.permute.xlu0 %1575 }
 0x7d1   : > { %v1584_v42 = vsel %vm1583_vm4, %v1582_v41, %v1576_v40  ;;  %v2202_v40 = vld [vmem:[%s784_s26] ss:$0 sm:$0xff] }
 0x7d4   : > { %v1580_v43 = vpop.permute.xlu1 %1579 }
 0x7d5   : > { %v1586_v44 = vsel %vm1585_vm5, %v1584_v42, %v1580_v43  ;;  %v2203_v42 = vld [vmem:[%s787_s18] ss:$0 sm:$0xff] }
 0x7d6   : > { %v1587_v45 = vpack.c.bf16 %v1586_v44, %v1586_v44 }
 0x7d8   : > { %2308 = vmatmul.mubr.msk.bf16.vlgmr.msra.gmra.mxu1 %vm851_vm2, %v1587_v45 }
 0x7d9   : > { %2327 = vmatprep.mubr.msk.bf16.mxu1 %vm2457_vm1, %v2456_v17  ;;  %2320 = vmatpush3.bf16.msra.mxu1 %v2388_v6 }
 0x7da   : > { %2321 = vmatprep.subr.bf16.mxu1 %v2456_v17 }
 0x7dd   : > { %2322 = vmatpush3.bf16.msra.mxu1 %v2389_v7 }
 0x7de   : > { %2323 = vmatprep.subr.bf16.mxu1 %v2456_v17 }
 0x7e1   : > { %2324 = vmatpush3.bf16.msra.mxu1 %v2390_v8 }
 0x7e2   : > { %2325 = vmatprep.subr.bf16.mxu1 %v2456_v17 }
 0x7e5   : > { %2326 = vmatpush3.bf16.msra.mxu1 %v2391_v9 }
 0x898   : > { %v1648_v47 = vpop.f32.mrf.mxu1 }
 0x899   : > { %v1649_v48 = vadd.f32 %v2186_v46, %v1648_v47 }
 0x89a   : > { %v2309_v50 = vpop.f32.mrf.mxu1 }
 0x89b   : > { %v1654_v49 = vadd.f32 %v1649_v48, %v2667_v19 }
 0x89c   : > { %v1651_v51 = vpop.f32.mrf.mxu1 }
 0x89d   : > { %v1657_v52 = vsel %vm851_vm2, %v1654_v49, 0.0 }
 0x89e   : > { %1658 = vadd.xlane.f32.xlu0 %v1657_v52  ;;  %v2310_v53 = vpop.f32.mrf.mxu1 }
 0x927   : > { %v1659_v54 = vpop.xlane.xlu0 %1658 }
 0x928   : > { %v1661_v55 = vmul.f32 0.03125, %v1659_v54 }
 0x92a   : > { %v1662_v56 = vsub.f32 %v1654_v49, %v1661_v55 }
 0x92c   : > { %v1663_v57 = vmul.f32 %v1662_v56, %v1662_v56 }
 0x92e   : > { %v1664_v58 = vsel %vm851_vm2, %v1663_v57, 0.0 }
 0x92f   : > { %1665 = vadd.xlane.f32.xlu1 %v1664_v58 }
 0x9b8   : > { %v1666_v19 = vpop.xlane.xlu1 %1665 }
 0x9b9   : > { %v1667_v61 = vmul.f32 0.03125, %v1666_v19 }
 0x9bb   : > { %v1668_v62 = vadd.f32 1e-12, %v1667_v61 }
 0x9bd   : > { %2408 = vrsqrt.f32 %v1668_v62 }
 0x9ca   : > { %v2409_v63 = vpop.eup %2408 }
 0x9cb   : > { %v1670_v1 = vmul.f32 %v2409_v63, %v1662_v56 }
 0x9cd   : > { %v1677_v3 = vmul.f32 %v2190_v0, %v1670_v1 }
 0x9cf   : > { %v1684_v4 = vadd.f32 %v2191_v2, %v1677_v3 }
 0x9d1   : > { %v1685_v5 = vpack.c.bf16 %v1684_v4, %v1684_v4 }
 0x9d3   : > { %2316 = vmatmul.mubr.msk.bf16.vlgmr.msra.gmra.mxu0 %vm851_vm2, %v1685_v5 }
 0xa93   : > { %v1746_v11 = vpop.f32.mrf.mxu0 }
 0xa94   : > { %v1747_v12 = vadd.f32 %v2192_v10, %v1746_v11 }
 0xa95   : > { %v2317_v13 = vpop.f32.mrf.mxu0 }
 0xa96   : > { %v1753_v14 = vmul.f32 0.70710677, %v1747_v12  ;;  %v1752_v20 = vmul.f32 0.5, %v1747_v12 }
 0xa97   : > { %v1749_v15 = vpop.f32.mrf.mxu0 }
 0xa98   : > { %2410 = verf.f32 %v1753_v14 }
 0xa99   : > { %v2318_v16 = vpop.f32.mrf.mxu0 }
 0xaa5   : > { %v2411_v18 = vpop.eup %2410 }
 0xaa6   : > { %v1755_v21 = vadd.f32 1.0, %v2411_v18 }
 0xaa8   : > { %v1756_v22 = vmul.f32 %v1755_v21, %v1752_v20 }
 0xaaa   : > { %v1757_v17 = vpack.c.bf16 %v1756_v22, %v1756_v22 }
 0xaac   : > { %2328 = vmatmul.mubr.msk.bf16.vlgmr.msra.gmra.mxu1 %vm1797_vm6, %v1757_v17 }
 0xb6c   : > { %v1835_v25 = vpop.f32.mrf.mxu1 }
 0xb6d   : > { %v1836_v26 = vadd.f32 %v2196_v24, %v1835_v25 }
 0xb6e   : > { %v2329_v27 = vpop.f32.mrf.mxu1 }
 0xb6f   : > { %v1841_v23 = vadd.f32 %v1836_v26, %v1684_v4 }
 0xb70   : > { %v1838_v28 = vpop.f32.mrf.mxu1 }
 0xb71   : > { %v1844_v29 = vsel %vm851_vm2, %v1841_v23, 0.0 }
 0xb72   : > { %1845 = vadd.xlane.f32.xlu0 %v1844_v29  ;;  %v2330_v30 = vpop.f32.mrf.mxu1 }
 0xbfb   : > { %v1846_v31 = vpop.xlane.xlu0 %1845 }
 0xbfc   : > { %v1847_v32 = vmul.f32 0.03125, %v1846_v31 }
 0xbfe   : > { %v1848_v33 = vsub.f32 %v1841_v23, %v1847_v32 }
 0xc00   : > { %v1849_v34 = vmul.f32 %v1848_v33, %v1848_v33 }
 0xc02   : > { %v1850_v35 = vsel %vm851_vm2, %v1849_v34, 0.0 }
 0xc03   : > { %1851 = vadd.xlane.f32.xlu0 %v1850_v35 }
 0xc8c   : > { %v1852_v36 = vpop.xlane.xlu0 %1851 }
 0xc8d   : > { %v1853_v37 = vmul.f32 0.03125, %v1852_v36 }
 0xc8f   : > { %v1854_v38 = vadd.f32 1e-12, %v1853_v37 }
 0xc91   : > { %2412 = vrsqrt.f32 %v1854_v38 }
 0xc9e   : > { %v2413_v39 = vpop.eup %2412 }
 0xc9f   : > { %v1856_v41 = vmul.f32 %v2413_v39, %v1848_v33 }
 0xca1   : > { %v1863_v43 = vmul.f32 %v2202_v40, %v1856_v41  ;;  %1875 = sbr.rel (%p2204_p5) target bundleno = 3657 (0xe49), region = 108 }
 0xca3   : > { %v1870_v44 = vadd.f32 %v2203_v42, %v1863_v43 }
 0xca5   : > { %1871 = vst.msk [vmem:[#allocation2] sm:$0xff] %vm851_vm2, %v1870_v44 }
 0xca6   : > { %v2414_v45 = vld [vmem:[%s2889_s17 + $0x8] sm:$0xff]   ;;  %v2472_v46 = vmov 0.0   ;;  %v2415_v47 = vld [vmem:[%s2889_s17] sm:$0xff]   ;;  %vm2473_vm7 = vmmov 0   ;;  %v1876_v48 = vpack.c.bf16 %v1870_v44, %v1870_v44 }
 0xca7   : > { %2331 = vmatprep.subr.bf16.mxu0 %v2472_v46  ;;  %2339 = vmatprep.subr.bf16.mxu1 %v2472_v46  ;;  %v2416_v50 = vld [vmem:[%s2890_s25 + $0x8] sm:$0xff]   ;;  %v2417_v49 = vld [vmem:[%s2890_s25] sm:$0xff]  }
 0xca8   : > { %2332 = vmatpush3.bf16.msra.mxu0 %v2414_v45  ;;  %2335 = vmatprep.mubr.msk.bf16.mxu0 %vm2473_vm7, %v2472_v46  ;;  %v1881_v51 = vld [vmem:[%s2891_s29] sm:$0x1] }
 0xca9   : > { %2333 = vmatprep.subr.bf16.mxu0 %v2472_v46  ;;  %2343 = vmatprep.mubr.msk.bf16.mxu1 %vm2473_vm7, %v2472_v46  ;;  %v1943_v59 = vld [vmem:[%s2892_s1] sm:$0x1] }
 0xcaa   : > { %2340 = vmatpush3.bf16.msra.mxu1 %v2416_v50 }
 0xcab   : > { %2341 = vmatprep.subr.bf16.mxu1 %v2472_v46 }
 0xcac   : > { %2334 = vmatpush3.bf16.msra.mxu0 %v2415_v47 }
 0xcae   : > { %2342 = vmatpush3.bf16.msra.mxu1 %v2417_v49 }
 0xcaf   : > { %2336 = vmatmul.mubr.msk.bf16.vlgmr.msra.gmra.mxu0 %vm851_vm2, %v1876_v48 }
 0xd6f   : > { %v1931_v52 = vpop.f32.mrf.mxu0 }
 0xd70   : > { %v1932_v53 = vadd.f32 %v1931_v52, %v1881_v51 }
 0xd71   : > { %v2337_v54 = vpop.f32.mrf.mxu0 }
 0xd72   : > { %2418 = vtanh.f32 %v1932_v53 }
 0xd73   : > { %v1934_v55 = vpop.f32.mrf.mxu0 }
 0xd75   : > { %v2338_v56 = vpop.f32.mrf.mxu0 }
 0xd7f   : > { %v2419_v57 = vpop.eup %2418 }
 0xd80   : > { %v1938_v58 = vpack.c.bf16 %v2419_v57, %v2419_v57 }
 0xd82   : > { %2344 = vmatmul.mubr.msk.bf16.vlgmr.msra.gmra.mxu1 %vm851_vm2, %v1938_v58 }
 0xe42   : > { %v1993_v60 = vpop.f32.mrf.mxu1 }
 0xe43   : > { %v1994_v19 = vadd.f32 %v1993_v60, %v1943_v59 }
 0xe44   : > { %v2345_v61 = vpop.f32.mrf.mxu1 }
 0xe45   : > { %1999 = vst [vmem:[#allocation3] sm:$0x1] %v1994_v19 }
 0xe46   : > { %v1996_v62 = vpop.f32.mrf.mxu1 }
 0xe48   : > { %v2346_v63 = vpop.f32.mrf.mxu1 }
 0xe49 PF: > { %p2351_p6 = scmp.eq.s32.totalorder %s2586_s22, 1  ;;  %s2474_s6 = smov [#allocation3]  }
 0xe4a   : > { %s2007_s2 = sshll.u32 %s2474_s6, 4  ;;  %s2008_s2 = int_to_ptr.vmem [resolvable:$true] %s2007_s2 }
 0xe4b   : > { %s2420_s16 = scalar_lea.vmem %s2008_s2, 16  ;;  %s2426_s3 = scalar_lea.vmem %s2008_s2, 32 }
 0xe4c   : > { %p2421_p7 = scmp.ne.s32.totalorder %s2008_s2, %s2420_s16  ;;  %p2427_p10 = scmp.lt.s32.totalorder %s2008_s2, %s2008_s2 }
 0xe4d   : > { %p2428_p11 = scmp.lt.s32.totalorder %s2426_s3, %s2420_s16 }
 0xe4e   : > { %p2422_p8 = pnand %p2421_p7, %p2351_p6 }
 0xe4f   : > { %p2429_p12 = por %p2428_p11, %p2427_p10 }
 0xe50   : > { %p2423_p9 = pneg %p2422_p8 }
 0xe52   : > { %p2430_p13 = pnand %p2429_p12, %p2423_p9 }
 0xe54   : > { %2433 = shalt.err (!%p2430_p13)
}
 0xe55   : > { %s2893_s26 = sld [smem:[#allocation17_spill]] }
 0xe5b   : > { %2348 = dma.vmem_to_hbm [thread:$0]  (%p2351_p6), %s2008_s2, 16, %s2893_s26, [#allocation4]  }
 0xe5c   : > { %2449 = dma.done.wait (%p2351_p6), [#allocation4], 16  }
 0xe5d   : > { %2451 = vsyncadd (%p2351_p6), [#allocation4], 4294967280 }
 0xe5e PF: > { %s2894_s19 = sld [smem:[#allocation6_spill]] }
 0xe64   : > { %s31_s1 = sadd.s32 1, %s2894_s19  }
 0xe65   : > { %p28_p0 = scmp.ge.s32.totalorder %s31_s1, 4  }
 0xe67   :  { %30 = sbr.rel (!%p28_p0) target bundleno = 13 (0xd), region = 168 }
 0xe6c   :  { %2020 = vsyncpa [#allocation4], 1 }
 0xe6d   :  { %2022 = vsyncpa [#allocation4 + $0x1], 1 }

</bundles_post_ra>
